<compile_context>
chip_gen: v5e
topology: v5e:2x2
jax: 0.10.0
libtpu: 0.0.40
codegen_flags: <defaults>
</compile_context>

<pallas_src>
import jax
import jax.numpy as jnp
from jax.experimental import pallas as pl
from jax.experimental.pallas import tpu as pltpu


def _actnorm_kernel(x_ref, p_ref, o_ref):
    # x_ref: (row_tile, lane_tile) data tile
    # p_ref: (row_tile, 2) packed per-row params: [:, 0]=bias, [:, 1]=exp(log_scale)
    bias = p_ref[:, 0:1]
    scale = p_ref[:, 1:2]
    o_ref[...] = (x_ref[...] + bias) * scale


def _choose_tile(total, unit, max_tile):
    """Largest divisor of `total` that is a multiple of `unit` and <= max_tile.
    Falls back to the full extent (always legal as a block dim) if none exists."""
    best = None
    cap = min(total, max_tile)
    t = unit
    while t <= cap:
        if total % t == 0:
            best = t
        t += unit
    return best if best is not None else total


def _sublane_unit(dtype):
    # 8 rows per sublane-group for 32-bit, 16 for 16-bit, 32 for 8-bit dtypes.
    bits = jnp.dtype(dtype).itemsize * 8
    return max(8, 256 // bits)


def _vmem_capacity_bytes():
    try:
        return int(pltpu.get_tpu_info().vmem_capacity_bytes)
    except Exception:
        return 128 << 20  # conservative default (v5e/v6e physical)


def _block_cap_bytes(vmem_capacity):
    # v7x: 64 MiB physical VMEM -> ~6 MiB blocks (2 in + 2 out ~ 24 MiB buffered).
    # v5e/v6e: 128 MiB physical -> ~8 MiB blocks.
    if vmem_capacity <= (64 << 20):
        return 6 << 20
    return 8 << 20


def actnorm_forward(x_nchw, bias, log_scale):
    """ActNorm forward: y = (x + bias) * exp(log_scale), per channel.

    x_nchw:    (N, C, H, W)
    bias:      (C,)
    log_scale: (C,)
    """
    N, C, H, W = x_nchw.shape
    dtype = x_nchw.dtype
    itemsize = jnp.dtype(dtype).itemsize
    sub = _sublane_unit(dtype)

    # Transpose-free (rows, lanes) views where every row maps to exactly one
    # channel. Prefer the split whose lane dim is 128-divisible (unmasked vst).
    layouts = [(N * C, H * W), (N * C * H, W)]
    R, L = layouts[0]
    for r, l in layouts:
        if l % 128 == 0:
            R, L = r, l
            break
    # TODO(synk): if neither split is 128-divisible we keep a ragged full-extent
    #             lane block (masked stores) instead of padding the lane dim.

    rows_per_nc = R // (N * C)
    ch = (jnp.arange(R) // rows_per_nc) % C
    params = jnp.stack(
        [bias.astype(dtype)[ch], jnp.exp(log_scale).astype(dtype)[ch]], axis=-1
    )  # (R, 2) packed per-row params -> single small DMA per row-group.

    x_rl = x_nchw.reshape(R, L)

    vmem_cap = _vmem_capacity_bytes()
    block_cap = _block_cap_bytes(vmem_cap)

    # Lane tile: as wide as possible (multiple of 128) such that a minimum-height
    # (sub, lane_tile) block still fits under the byte cap.
    lane_tile = _choose_tile(L, 128, max(128, block_cap // (sub * itemsize)))
    # Row tile: multiple of the dtype sublane unit, filling the byte cap.
    max_rows = max(sub, block_cap // max(1, lane_tile * itemsize))
    row_tile = _choose_tile(R, sub, max_rows)

    # Ensure at least 2 blocks on a "parallel" axis so both v7x TensorCores (and
    # their DMA engines) participate; costs at most one extra ~0.35us step on
    # single-TC chips.
    if R // row_tile == 1 and L // lane_tile == 1:
        lane_half = _choose_tile(L, 128, max(128, lane_tile // 2))
        if lane_half < lane_tile and L % lane_half == 0:
            lane_tile = lane_half
        else:
            row_half = _choose_tile(R, sub, max(sub, row_tile // 2))
            if row_half < row_tile and R % row_half == 0:
                row_tile = row_half

    grid = (R // row_tile, L // lane_tile)
    block_bytes = row_tile * lane_tile * itemsize
    # VMEM accounting: 2 double-buffered x blocks + 2 out blocks + 2 param blocks
    # (each (row_tile, 2) block pads to row_tile x 128 lanes in VMEM) + slack.
    param_buf = row_tile * 128 * itemsize
    vmem_bytes = 4 * block_bytes + 2 * param_buf + (2 << 20)
    vmem_bytes = int(
        min(max(vmem_bytes, 16 << 20), max(vmem_cap - (8 << 20), 16 << 20))
    )

    cost = pl.CostEstimate(
        flops=2 * R * L,
        transcendentals=0,
        bytes_accessed=2 * R * L * itemsize + params.size * itemsize,
    )

    out_rl = pl.pallas_call(
        _actnorm_kernel,
        out_shape=jax.ShapeDtypeStruct((R, L), dtype),
        grid_spec=pltpu.PrefetchScalarGridSpec(
            num_scalar_prefetch=0,
            grid=grid,
            in_specs=[
                pl.BlockSpec((row_tile, lane_tile), lambda i, j: (i, j)),
                # Constant block index along the inner (lane) axis: params are
                # not re-DMA'd every lane step.
                pl.BlockSpec((row_tile, 2), lambda i, j: (i, 0)),
            ],
            out_specs=pl.BlockSpec((row_tile, lane_tile), lambda i, j: (i, j)),
        ),
        compiler_params=pltpu.CompilerParams(
            dimension_semantics=("parallel", "parallel"),
            vmem_limit_bytes=vmem_bytes,
        ),
        cost_estimate=cost,
    )(x_rl, params)

    # Free view back to NCHW.
    return out_rl.reshape(N, C, H, W)


if __name__ == "__main__":
    key = jax.random.PRNGKey(0)
    kx, kb, ks = jax.random.split(key, 3)

    # dim = C = 4
    N, C, H, W = 2, 4, 16, 16
    x = jax.random.normal(kx, (N, C, H, W), dtype=jnp.float32)
    bias = 0.1 * jax.random.normal(kb, (C,), dtype=jnp.float32)
    log_scale = 0.1 * jax.random.normal(ks, (C,), dtype=jnp.float32)

    y = actnorm_forward(x, bias, log_scale)
    y = jax.block_until_ready(y)

    y_ref = (x + bias[None, :, None, None]) * jnp.exp(log_scale)[None, :, None, None]
    assert y.shape == x.shape
    assert jnp.allclose(y, y_ref, atol=1e-6, rtol=1e-6)

    # Second, slightly larger check (exercises lane tiling >128 and >=16 rows).
    N2, C2, H2, W2 = 2, 8, 32, 32
    x2 = jax.random.normal(kx, (N2, C2, H2, W2), dtype=jnp.float32)
    b2 = 0.1 * jax.random.normal(kb, (C2,), dtype=jnp.float32)
    s2 = 0.1 * jax.random.normal(ks, (C2,), dtype=jnp.float32)
    y2 = jax.block_until_ready(actnorm_forward(x2, b2, s2))
    y2_ref = (x2 + b2[None, :, None, None]) * jnp.exp(s2)[None, :, None, None]
    assert jnp.allclose(y2, y2_ref, atol=1e-6, rtol=1e-6)

    print("KERNEL_OK")
</pallas_src>

<mosaic_0001>
module attributes {stable_mosaic.version = 11 : i64} {
  func.func @_actnorm_kernel(%arg0: i32, %arg1: i32, %arg2: memref<8x128xf32, #tpu.memory_space<vmem>>, %arg3: memref<8x2xf32, #tpu.memory_space<vmem>>, %arg4: memref<8x128xf32, #tpu.memory_space<vmem>>) attributes {dimension_semantics = [#tpu.dimension_semantics<parallel>, #tpu.dimension_semantics<parallel>], iteration_bounds = array<i64: 1, 2>, scalar_prefetch = 0 : i64, scratch_operands = 0 : i64, tpu.core_type = #tpu.core_type<tc>, window_params = [{transform_indices = @transform_0, window_bounds = array<i64: 8, 128>}, {transform_indices = @transform_1, window_bounds = array<i64: 8, 2>}, {transform_indices = @transform_2, window_bounds = array<i64: 8, 128>}]} {
    %c0 = arith.constant 0 : index
    %c0_0 = arith.constant 0 : index
    %0 = vector.load %arg3[%c0, %c0_0] : memref<8x2xf32, #tpu.memory_space<vmem>>, vector<8x1xf32>
    %c0_1 = arith.constant 0 : index
    %c1 = arith.constant 1 : index
    %1 = vector.load %arg3[%c0_1, %c1] : memref<8x2xf32, #tpu.memory_space<vmem>>, vector<8x1xf32>
    %c0_2 = arith.constant 0 : index
    %c0_3 = arith.constant 0 : index
    %2 = vector.load %arg2[%c0_2, %c0_3] : memref<8x128xf32, #tpu.memory_space<vmem>>, vector<8x128xf32>
    %3 = vector.broadcast %0 : vector<8x1xf32> to vector<8x128xf32>
    %4 = arith.addf %2, %3 : vector<8x128xf32>
    %5 = vector.broadcast %1 : vector<8x1xf32> to vector<8x128xf32>
    %6 = arith.mulf %4, %5 : vector<8x128xf32>
    %c0_4 = arith.constant 0 : index
    %c0_5 = arith.constant 0 : index
    %7 = vector.load %arg4[%c0_4, %c0_5] : memref<8x128xf32, #tpu.memory_space<vmem>>, vector<8x128xf32>
    tpu.vector_store %arg4[%c0_4, %c0_5], %6 {strides = array<i32>} : memref<8x128xf32, #tpu.memory_space<vmem>>, vector<8x128xf32>,
    return
  }
  func.func @transform_0(%arg0: i32, %arg1: i32) -> (i32, i32) {
    %c0_i32 = arith.constant 0 : i32
    return %arg0, %arg1 : i32, i32
  }
  func.func @transform_1(%arg0: i32, %arg1: i32) -> (i32, i32) {
    %c0_i32 = arith.constant 0 : i32
    %c0_i32_0 = arith.constant 0 : i32
    return %arg0, %c0_i32 : i32, i32
  }
  func.func @transform_2(%arg0: i32, %arg1: i32) -> (i32, i32) {
    %c0_i32 = arith.constant 0 : i32
    return %arg0, %arg1 : i32, i32
  }
}

</mosaic_0001>

<bundles_post_ra>
// kernel: tpu_custom_call.1
= control target key start
LH: loop header
LB: loop body
LE: loop exit
PB: predicated region body
PF: predicated region fallthrough
CT: control target
= control target key end

     0   :  { %7 = vsyncpa [#allocation3], 0  ;;  %s659_s0 = inlined_call_operand.hbm [shape: f32[8,256], index: 0, kind: input, shape index: {}]   ;;  %s660_s1 = inlined_call_operand.vmem [shape: f32[8,2], index: 1, kind: input, shape index: {}]   ;;  %s661_s2 = inlined_call_operand.hbm [shape: f32[8,256], index: 2, kind: output, shape index: {}]  }
   0x1   :  { %9 = vsyncpa [#allocation3 + $0x1], 0 }
   0x2   :  { %10 = vsyncpa [#allocation4], 0 }
   0x3   :  { %12 = vsyncpa [#allocation4 + $0x1], 0  ;;  %s536_s9 = smov 0   ;;  %s538_s10 = smov 0  }
   0x4   :  { %s540_s11 = smov 0   ;;  %s542_s12 = smov 0  }
   0x5   :  { %s544_s13 = smov 0   ;;  %s546_s14 = smov 0  }
   0x6 LB: > { %s325_s15 = sadd.s32 4294967295, %s517_s14   ;;  %s326_s16 = sadd.s32 4294967294, %s517_s14   ;;  %s517_s14 = sphi %s546_s14, %s18_s14   ;;  %s513_s13 = sphi %s544_s13, %s670_s13   ;;  %s509_s12 = sphi %s542_s12, %s669_s12   ;;  %s505_s11 = sphi %s540_s11, %s668_s11   ;;  %s501_s10 = sphi %s538_s10, %s667_s10   ;;  %s497_s9 = sphi %s536_s9, %s666_s9  }
   0x7   : > { %s27_s17 = sadd.s32 1, %s513_s13  ;;  %s39_s18 = sadd.s32 1, %s505_s11 }
   0x8   : > { %p28_p0 = scmp.ge.s32.totalorder %s27_s17, 2  ;;  %p46_p1 = scmp.ne.s32.totalorder %s505_s11, %s501_s10 }
   0x9   : > { %p47_p2 = scmp.eq.s32.totalorder %s517_s14, 0  ;;  %p52_p3 = scmp.ne.s32.totalorder %s501_s10, %s497_s9 }
   0xa   : > { %s672_s17 = smov (%p28_p0, %s27_s17), 0  ;;  %p53_p5 = scmp.eq.s32.totalorder %s325_s15, 0 }
   0xb   : > { %p577_p4 = por %p47_p2, %p46_p1  ;;  %s35_s20 = ssub.s32 %s513_s13, %s672_s17 }
   0xc   : > { %p104_p6 = scmp.eq.s32.totalorder %s325_s15, 1  ;;  %p37_p7 = scmp.eq.s32.totalorder %s35_s20, 0 }
   0xd   : > { %p583_p8 = por %p53_p5, %p52_p3  ;;  %p110_p10 = scmp.eq.s32.totalorder %s326_s16, 1 }
   0xe   : > { %p587_p9 = por %p104_p6, %p46_p1  ;;  %p329_p12 = scmp.ge.s32.totalorder %s517_s14, 2 }
   0xf   : > { %s592_s23 = scalar_select %p37_p7, %s505_s11, %s39_s18  }
  0x10   : > { %p594_p11 = por %p110_p10, %p52_p3  ;;  %p351_p13 = scmp.lt.s32.totalorder %s517_s14, 2 }
  0x11   : > { %s137_s25 = sand.u32 1, %s505_s11   ;;  %s331_s27 = sshll.u32 %s513_s13, 3 }
  0x12   : > { %s330_s26 = sshll.u32 %s137_s25, 3  ;;  %s147_s30 = scalar_lea.hbm %s659_s0, %s331_s27 }
  0x13   : > { %s141_s3 = scalar_lea.vmem [#allocation2], %s330_s26  ;;  %s149_s5 = sshll.u32 %s147_s30, 4  ;;  %s150_s5 = int_to_ptr.hbm [resolvable:$true] %s149_s5 }
  0x14   : > { %s151_s4 = sshll.u32 %s141_s3, 4  ;;  %p344_p0 = pnand %p351_p13, %p577_p4  ;;  %s152_s4 = int_to_ptr.vmem [resolvable:$true] %s151_s4 }
  0x15   : > { %p332_p1 = scmp.ge.s32.totalorder %s517_s14, 1  ;;  %p156_p2 = scmp.lt.s32.totalorder %s517_s14, 3 }
  0x16   : > { %s138_s6 = scalar_lea.sflag [#allocation3], %s137_s25 }
  0x17   : > { %346 = dma.hbm_to_vmem [thread:$0]  (!%p344_p0), %s150_s5, 128, %s152_s4, %s138_s6  }
  0x18   : > { %p157_p3 = pnand %p332_p1, %p156_p2 }
  0x19   : > { %s610_s7 = sand.u32 (!%p157_p3), 1, %s501_s10  }
  0x1a   : > { %160 = sbr.rel (%p157_p3) target bundleno = 163 (0xa3), region = 28  ;;  %s333_s8 = sshll.u32 (!%p157_p3), %s610_s7, 3 }
  0x1b   : > { %s163_s15 = scalar_lea.sflag (!%p157_p3), [#allocation3], %s610_s7  ;;  %s166_s16 = scalar_lea.vmem (!%p157_p3), [#allocation2], %s333_s8 }
  0x1f   : > { %488 = dma.done.wait (%p583_p8), %s163_s15, 128  }
  0x20   : > { %490 = vsyncadd (%p583_p8), %s163_s15, 4294967168  ;;  %v519_v0 = vmov 0   ;;  %v196_v1 = vld [vmem:[%s660_s1] sm:$0xff]  ;;  %v520_v2 = vmov 1   ;;  %s336_s20 = sshll.u32 %s509_s12, 3  ;;  %s191_s21 = scalar_lea.vmem [#allocation5], %s333_s8 }
  0x21   : > { %403 = vset.pattern.permute.xlu0 %v519_v0  ;;  %s223_s27 = scalar_lea.hbm %s661_s2, %s336_s20  ;;  %v197_v4 = vld [vmem:[%s166_s16] sm:$0xff]  ;;  %s225_s28 = sshll.u32 %s191_s21, 4  ;;  %s226_s28 = int_to_ptr.vmem [resolvable:$true] %s225_s28 }
  0x22   : > { %200 = vperm.xlu0 %403, %v196_v1   ;;  %s227_s29 = sshll.u32 %s223_s27, 4  ;;  %s211_s30 = scalar_lea.sflag [#allocation4], %s610_s7  ;;  %s228_s29 = int_to_ptr.hbm [resolvable:$true] %s227_s29 }
  0x23   : > { %s449_s3 = sshra.s32 %s228_s29, 4  ;;  %s455_s6 = scalar_lea.hbm %s661_s2, 16  ;;  %s450_s3 = int_to_ptr.hbm [resolvable:$true] %s449_s3 }
  0x24   : > { %s451_s4 = scalar_lea.hbm %s450_s3, 8  ;;  %p456_p7 = scmp.lt.s32.totalorder %s450_s3, %s661_s2 }
  0x25   : > { %p452_p4 = scmp.ne.s32.totalorder %s450_s3, %s451_s4  ;;  %p457_p8 = scmp.lt.s32.totalorder %s455_s6, %s451_s4 }
  0x27   : > { %p453_p5 = pnand %p452_p4, %p587_p9  ;;  %p458_p10 = por %p457_p8, %p456_p7 }
  0x29   : > { %p454_p6 = pneg %p453_p5 }
  0x2a   : > { %404 = vset.pattern.permute.xlu0 %v520_v2 }
  0x2b   : > { %205 = vperm.xlu0 %404, %v196_v1   ;;  %p459_p13 = pnand %p458_p10, %p454_p6 }
  0x94   : > { %v201_v3 = vpop.permute.xlu0 %200 }
  0x95   : > { %v203_v5 = vadd.f32 %v201_v3, %v197_v4 }
  0x9d   : > { %v206_v6 = vpop.permute.xlu0 %205 }
  0x9e   : > { %v208_v7 = vmul.f32 %v206_v6, %v203_v5 }
  0xa0   : > { %209 = vst [vmem:[%s191_s21] sm:$0xff] %v208_v7 }
  0xa1   : > { %462 = shalt.err (!%p459_p13)
}
  0xa2   : > { %341 = dma.vmem_to_hbm [thread:$0]  (%p587_p9), %s226_s28, 128, %s228_s29, %s211_s30  }
  0xa3 PF: > { %s239_s7 = sand.u32 1, %s497_s9   ;;  %p348_p0 = pnand %p329_p12, %p594_p11 }
  0xa4   : > { %s240_s16 = scalar_lea.sflag [#allocation4], %s239_s7 }
  0xa5   : > { %p349_p1 = pneg %p348_p0 }
  0xa7   : > { %492 = dma.done.wait (%p349_p1), %s240_s16, 128  }
  0xa8   : > { %494 = vsyncadd (%p349_p1), %s240_s16, 4294967168  ;;  %s18_s14 = sadd.s32 1, %s517_s14   ;;  %s666_s9 = smov %s501_s10 }
  0xa9   : > { %p15_p2 = scmp.ge.s32.totalorder %s18_s14, 4   ;;  %s667_s10 = smov %s505_s11 }
  0xaa   : > { %s668_s11 = smov %s592_s23  ;;  %s669_s12 = smov %s513_s13 }
  0xab   : > { %s670_s13 = smov %s672_s17  ;;  %17 = sbr.rel (!%p15_p2) target bundleno = 6 (0x6), region = 76 }
  0xb0   :  { %246 = vsyncpa [#allocation3], 1 }
  0xb1   :  { %248 = vsyncpa [#allocation3 + $0x1], 1 }
  0xb2   :  { %249 = vsyncpa [#allocation4], 1 }
  0xb3   :  { %251 = vsyncpa [#allocation4 + $0x1], 1 }

</bundles_post_ra>
